<compile_context>
chip_gen: v6e
topology: v6e:2x2x1
jax: 0.10.0
libtpu: 0.0.40
codegen_flags: <defaults>
</compile_context>

<pallas_src>
import jax
import jax.numpy as jnp
from jax.experimental import pallas as pl
from jax.experimental.pallas import tpu as pltpu

LANE = 128


def _round_up(x, m):
    return ((x + m - 1) // m) * m


# -----------------------------------------------------------------------------
# Pallas kernel: 3 matmuls + ReLU / ReLU / tanh, fully lane-dense.
# -----------------------------------------------------------------------------
def _policy_mlp_kernel(obs_ref, noise_ref,
                       w1o_ref, w1n_ref, b1_ref,
                       w2_ref, b2_ref, w3_ref, b3_ref,
                       act_ref):
    obs = obs_ref[...]
    noise = noise_ref[...]

    # Layer 1: split-weight form of dot(concat([obs, noise], 1), w1) + b1.
    # Padded noise lanes multiply zero rows of w1_noise -> contribute 0.
    h = (jnp.dot(obs, w1o_ref[...], preferred_element_type=jnp.float32)
         + jnp.dot(noise, w1n_ref[...], preferred_element_type=jnp.float32)
         + b1_ref[...])
    h = jnp.maximum(h, 0.0)

    # Layer 2.
    h = jnp.dot(h, w2_ref[...], preferred_element_type=jnp.float32) + b2_ref[...]
    h = jnp.maximum(h, 0.0)

    # Output layer + tanh squashing (padded output lanes stay exactly 0).
    y = jnp.dot(h, w3_ref[...], preferred_element_type=jnp.float32) + b3_ref[...]
    act_ref[...] = jnp.tanh(y)


# -----------------------------------------------------------------------------
# Wrapper (the "forward"): draws the noise, runs the Pallas MLP, squashes.
# -----------------------------------------------------------------------------
def stochastic_nn_policy_forward(obs, noise_key, padded_params, action_sizes,
                                 *, batch_tile=512):
    """Returns (act, noise), each (B, action_sizes) float32."""
    w1o, w1n, b1, w2, b2, w3, b3 = padded_params
    obs = obs.astype(jnp.float32)
    B, state = obs.shape
    h1p = w1o.shape[1]
    h2p = w2.shape[1]
    ap = w3.shape[1]

    # torch.randn((B, action_sizes)) drawn inside forward; padded to the
    # 128-lane width with zeros so every kernel operand is lane-dense.
    noise = jax.random.normal(noise_key, (B, action_sizes), jnp.float32)
    noise_pad = jnp.zeros((B, ap), jnp.float32).at[:, :action_sizes].set(noise)

    # TB is either the whole batch or a 512-row tile, small enough that
    # double-buffered obs/noise/act tiles fit every generation's scoped VMEM.
    tb = B if B <= batch_tile else batch_tile
    grid = (pl.cdiv(B, tb),)

    resident = lambda i: (0, 0)   # weights/biases: VMEM-resident across grid
    rowblock = lambda i: (i, 0)   # batch-tiled activations

    act_pad = pl.pallas_call(
        _policy_mlp_kernel,
        out_shape=jax.ShapeDtypeStruct((B, ap), jnp.float32),
        grid_spec=pltpu.PrefetchScalarGridSpec(
            num_scalar_prefetch=0,
            grid=grid,
            in_specs=[
                pl.BlockSpec((tb, state), rowblock),   # obs
                pl.BlockSpec((tb, ap), rowblock),      # noise (padded slab)
                pl.BlockSpec((state, h1p), resident),  # w1_obs
                pl.BlockSpec((ap, h1p), resident),     # w1_noise (pad rows=0)
                pl.BlockSpec((1, h1p), resident),      # b1
                pl.BlockSpec((h1p, h2p), resident),    # w2
                pl.BlockSpec((1, h2p), resident),      # b2
                pl.BlockSpec((h2p, ap), resident),     # w3
                pl.BlockSpec((1, ap), resident),       # b3
            ],
            out_specs=pl.BlockSpec((tb, ap), rowblock),  # act (lane-dense slab)
        ),
        compiler_params=pltpu.CompilerParams(
            dimension_semantics=("parallel",)),          # v7x: shard across TCs
    )(obs, noise_pad, w1o, w1n, b1, w2, b2, w3, b3)

    # Slice the lane-dense slab back to the true action width (cheap XLA op).
    return act_pad[:, :action_sizes], noise


# -----------------------------------------------------------------------------
# Parameter construction (synthetic) and one-time host-side prep
# -----------------------------------------------------------------------------
def init_params(key, state_sizes, action_sizes, hidden_sizes):
    """Unpadded MLP params: Linear -> ReLU -> Linear -> ReLU -> Linear."""
    in_dim = state_sizes + action_sizes
    dims = [in_dim] + list(hidden_sizes) + [action_sizes]
    params = []
    for i in range(len(dims) - 1):
        key, kw = jax.random.split(key)
        w = jax.random.normal(kw, (dims[i], dims[i + 1]), jnp.float32)
        w = w / jnp.sqrt(jnp.float32(dims[i]))
        b = jnp.zeros((1, dims[i + 1]), jnp.float32)
        params.extend([w, b])
    return tuple(params)


def pad_and_split_params(params, state_sizes, action_sizes):
    """One-time init-side prep: split w1 into (obs | noise) row blocks and
    zero-pad every feature dim to the 128-lane width (lane-dense kernel)."""
    w1, b1, w2, b2, w3, b3 = params
    h1, h2, a = w1.shape[1], w2.shape[1], w3.shape[1]
    h1p, h2p, ap = _round_up(h1, LANE), _round_up(h2, LANE), _round_up(a, LANE)

    w1_obs = jnp.zeros((state_sizes, h1p), jnp.float32).at[:, :h1].set(
        w1[:state_sizes, :])
    w1_noise = jnp.zeros((ap, h1p), jnp.float32).at[:action_sizes, :h1].set(
        w1[state_sizes:, :])
    b1p = jnp.zeros((1, h1p), jnp.float32).at[:, :h1].set(b1)
    w2p = jnp.zeros((h1p, h2p), jnp.float32).at[:h1, :h2].set(w2)
    b2p = jnp.zeros((1, h2p), jnp.float32).at[:, :h2].set(b2)
    w3p = jnp.zeros((h2p, ap), jnp.float32).at[:h2, :a].set(w3)
    b3p = jnp.zeros((1, ap), jnp.float32).at[:, :a].set(b3)
    return (w1_obs, w1_noise, b1p, w2p, b2p, w3p, b3p)


def reference_forward(obs, noise, params):
    """Pure-JAX reference on the UNPADDED params, fed the same noise."""
    w1, b1, w2, b2, w3, b3 = params
    x = jnp.concatenate([obs, noise], axis=1)
    h = jnp.maximum(x @ w1 + b1, 0.0)
    h = jnp.maximum(h @ w2 + b2, 0.0)
    return jnp.tanh(h @ w3 + b3)


if __name__ == "__main__":
    # Small shapes consistent with the module's forward.
    batch = 8
    state_sizes = 12
    action_sizes = 4
    hidden_sizes = (32, 32)

    key = jax.random.PRNGKey(0)
    k_obs, k_params, k_noise = jax.random.split(key, 3)
    obs = jax.random.normal(k_obs, (batch, state_sizes), jnp.float32)

    params = init_params(k_params, state_sizes, action_sizes, hidden_sizes)
    padded = pad_and_split_params(params, state_sizes, action_sizes)

    act, noise = stochastic_nn_policy_forward(
        obs, noise_key=k_noise, padded_params=padded,
        action_sizes=action_sizes)
    act = jax.block_until_ready(act)

    assert act.shape == (batch, action_sizes)
    assert noise.shape == (batch, action_sizes)
    assert bool(jnp.isfinite(act).all()) and bool(jnp.isfinite(noise).all())
    assert bool((jnp.abs(act) <= 1.0).all())   # tanh-squashed actions

    # Verify the deterministic MLP + tanh path against a pure-JAX reference
    # using the same noise sample.
    ref = reference_forward(obs, noise, params)
    assert jnp.allclose(act, ref, atol=1e-5, rtol=1e-5), (
        float(jnp.max(jnp.abs(act - ref))))

    print("KERNEL_OK")
</pallas_src>

<mosaic_0001>
module attributes {stable_mosaic.version = 11 : i64} {
  func.func @_policy_mlp_kernel(%arg0: i32, %arg1: memref<8x12xf32, #tpu.memory_space<vmem>>, %arg2: memref<8x128xf32, #tpu.memory_space<vmem>>, %arg3: memref<12x128xf32, #tpu.memory_space<vmem>>, %arg4: memref<128x128xf32, #tpu.memory_space<vmem>>, %arg5: memref<1x128xf32, #tpu.memory_space<vmem>>, %arg6: memref<128x128xf32, #tpu.memory_space<vmem>>, %arg7: memref<1x128xf32, #tpu.memory_space<vmem>>, %arg8: memref<128x128xf32, #tpu.memory_space<vmem>>, %arg9: memref<1x128xf32, #tpu.memory_space<vmem>>, %arg10: memref<8x128xf32, #tpu.memory_space<vmem>>) attributes {dimension_semantics = [#tpu.dimension_semantics<parallel>], iteration_bounds = array<i64: 1>, scalar_prefetch = 0 : i64, scratch_operands = 0 : i64, tpu.core_type = #tpu.core_type<tc>, window_params = [{transform_indices = @transform_0, window_bounds = array<i64: 8, 12>}, {transform_indices = @transform_1, window_bounds = array<i64: 8, 128>}, {pipeline_mode = #tpu.pipeline_mode<synchronous>, transform_indices = @transform_2, window_bounds = array<i64: 12, 128>}, {pipeline_mode = #tpu.pipeline_mode<synchronous>, transform_indices = @transform_3, window_bounds = array<i64: 128, 128>}, {pipeline_mode = #tpu.pipeline_mode<synchronous>, transform_indices = @transform_4, window_bounds = array<i64: 1, 128>}, {pipeline_mode = #tpu.pipeline_mode<synchronous>, transform_indices = @transform_5, window_bounds = array<i64: 128, 128>}, {pipeline_mode = #tpu.pipeline_mode<synchronous>, transform_indices = @transform_6, window_bounds = array<i64: 1, 128>}, {pipeline_mode = #tpu.pipeline_mode<synchronous>, transform_indices = @transform_7, window_bounds = array<i64: 128, 128>}, {pipeline_mode = #tpu.pipeline_mode<synchronous>, transform_indices = @transform_8, window_bounds = array<i64: 1, 128>}, {transform_indices = @transform_9, window_bounds = array<i64: 8, 128>}]} {
    %c0 = arith.constant 0 : index
    %c0_0 = arith.constant 0 : index
    %0 = vector.load %arg1[%c0, %c0_0] : memref<8x12xf32, #tpu.memory_space<vmem>>, vector<8x12xf32>
    %c0_1 = arith.constant 0 : index
    %c0_2 = arith.constant 0 : index
    %1 = vector.load %arg2[%c0_1, %c0_2] : memref<8x128xf32, #tpu.memory_space<vmem>>, vector<8x128xf32>
    %c0_3 = arith.constant 0 : index
    %c0_4 = arith.constant 0 : index
    %2 = vector.load %arg3[%c0_3, %c0_4] : memref<12x128xf32, #tpu.memory_space<vmem>>, vector<12x128xf32>
    %cst = arith.constant dense<0.000000e+00> : vector<8x128xf32>
    %3 = tpu.matmul %0, %2, %cst {dimension_numbers = #tpu.dot_dimension_numbers<[1], [0], [0], [1], [0, 0, 1, 1], [], []>} : vector<8x12xf32>, vector<12x128xf32>, vector<8x128xf32> -> vector<8x128xf32>
    %c0_5 = arith.constant 0 : index
    %c0_6 = arith.constant 0 : index
    %4 = vector.load %arg4[%c0_5, %c0_6] : memref<128x128xf32, #tpu.memory_space<vmem>>, vector<128x128xf32>
    %cst_7 = arith.constant dense<0.000000e+00> : vector<8x128xf32>
    %5 = tpu.matmul %1, %4, %cst_7 {dimension_numbers = #tpu.dot_dimension_numbers<[1], [0], [0], [1], [0, 0, 1, 1], [], []>} : vector<8x128xf32>, vector<128x128xf32>, vector<8x128xf32> -> vector<8x128xf32>
    %6 = arith.addf %3, %5 : vector<8x128xf32>
    %c0_8 = arith.constant 0 : index
    %c0_9 = arith.constant 0 : index
    %7 = vector.load %arg5[%c0_8, %c0_9] : memref<1x128xf32, #tpu.memory_space<vmem>>, vector<1x128xf32>
    %8 = vector.broadcast %7 : vector<1x128xf32> to vector<8x128xf32>
    %9 = arith.addf %6, %8 : vector<8x128xf32>
    %cst_10 = arith.constant 0.000000e+00 : f32
    %10 = vector.broadcast %cst_10 : f32 to vector<8x128xf32>
    %11 = arith.maximumf %9, %10 : vector<8x128xf32>
    %c0_11 = arith.constant 0 : index
    %c0_12 = arith.constant 0 : index
    %12 = vector.load %arg6[%c0_11, %c0_12] : memref<128x128xf32, #tpu.memory_space<vmem>>, vector<128x128xf32>
    %cst_13 = arith.constant dense<0.000000e+00> : vector<8x128xf32>
    %13 = tpu.matmul %11, %12, %cst_13 {dimension_numbers = #tpu.dot_dimension_numbers<[1], [0], [0], [1], [0, 0, 1, 1], [], []>} : vector<8x128xf32>, vector<128x128xf32>, vector<8x128xf32> -> vector<8x128xf32>
    %c0_14 = arith.constant 0 : index
    %c0_15 = arith.constant 0 : index
    %14 = vector.load %arg7[%c0_14, %c0_15] : memref<1x128xf32, #tpu.memory_space<vmem>>, vector<1x128xf32>
    %15 = vector.broadcast %14 : vector<1x128xf32> to vector<8x128xf32>
    %16 = arith.addf %13, %15 : vector<8x128xf32>
    %cst_16 = arith.constant 0.000000e+00 : f32
    %17 = vector.broadcast %cst_16 : f32 to vector<8x128xf32>
    %18 = arith.maximumf %16, %17 : vector<8x128xf32>
    %c0_17 = arith.constant 0 : index
    %c0_18 = arith.constant 0 : index
    %19 = vector.load %arg8[%c0_17, %c0_18] : memref<128x128xf32, #tpu.memory_space<vmem>>, vector<128x128xf32>
    %cst_19 = arith.constant dense<0.000000e+00> : vector<8x128xf32>
    %20 = tpu.matmul %18, %19, %cst_19 {dimension_numbers = #tpu.dot_dimension_numbers<[1], [0], [0], [1], [0, 0, 1, 1], [], []>} : vector<8x128xf32>, vector<128x128xf32>, vector<8x128xf32> -> vector<8x128xf32>
    %c0_20 = arith.constant 0 : index
    %c0_21 = arith.constant 0 : index
    %21 = vector.load %arg9[%c0_20, %c0_21] : memref<1x128xf32, #tpu.memory_space<vmem>>, vector<1x128xf32>
    %22 = vector.broadcast %21 : vector<1x128xf32> to vector<8x128xf32>
    %23 = arith.addf %20, %22 : vector<8x128xf32>
    %24 = math.tanh %23 : vector<8x128xf32>
    %c0_22 = arith.constant 0 : index
    %c0_23 = arith.constant 0 : index
    %25 = vector.load %arg10[%c0_22, %c0_23] : memref<8x128xf32, #tpu.memory_space<vmem>>, vector<8x128xf32>
    tpu.vector_store %arg10[%c0_22, %c0_23], %24 {strides = array<i32>} : memref<8x128xf32, #tpu.memory_space<vmem>>, vector<8x128xf32>,
    return
  }
  func.func @transform_0(%arg0: i32) -> (i32, i32) {
    %c0_i32 = arith.constant 0 : i32
    %c0_i32_0 = arith.constant 0 : i32
    return %arg0, %c0_i32 : i32, i32
  }
  func.func @transform_1(%arg0: i32) -> (i32, i32) {
    %c0_i32 = arith.constant 0 : i32
    %c0_i32_0 = arith.constant 0 : i32
    return %arg0, %c0_i32 : i32, i32
  }
  func.func @transform_2(%arg0: i32) -> (i32, i32) {
    %c0_i32 = arith.constant 0 : i32
    %c0_i32_0 = arith.constant 0 : i32
    %c0_i32_1 = arith.constant 0 : i32
    return %c0_i32, %c0_i32_0 : i32, i32
  }
  func.func @transform_3(%arg0: i32) -> (i32, i32) {
    %c0_i32 = arith.constant 0 : i32
    %c0_i32_0 = arith.constant 0 : i32
    %c0_i32_1 = arith.constant 0 : i32
    return %c0_i32, %c0_i32_0 : i32, i32
  }
  func.func @transform_4(%arg0: i32) -> (i32, i32) {
    %c0_i32 = arith.constant 0 : i32
    %c0_i32_0 = arith.constant 0 : i32
    %c0_i32_1 = arith.constant 0 : i32
    return %c0_i32, %c0_i32_0 : i32, i32
  }
  func.func @transform_5(%arg0: i32) -> (i32, i32) {
    %c0_i32 = arith.constant 0 : i32
    %c0_i32_0 = arith.constant 0 : i32
    %c0_i32_1 = arith.constant 0 : i32
    return %c0_i32, %c0_i32_0 : i32, i32
  }
  func.func @transform_6(%arg0: i32) -> (i32, i32) {
    %c0_i32 = arith.constant 0 : i32
    %c0_i32_0 = arith.constant 0 : i32
    %c0_i32_1 = arith.constant 0 : i32
    return %c0_i32, %c0_i32_0 : i32, i32
  }
  func.func @transform_7(%arg0: i32) -> (i32, i32) {
    %c0_i32 = arith.constant 0 : i32
    %c0_i32_0 = arith.constant 0 : i32
    %c0_i32_1 = arith.constant 0 : i32
    return %c0_i32, %c0_i32_0 : i32, i32
  }
  func.func @transform_8(%arg0: i32) -> (i32, i32) {
    %c0_i32 = arith.constant 0 : i32
    %c0_i32_0 = arith.constant 0 : i32
    %c0_i32_1 = arith.constant 0 : i32
    return %c0_i32, %c0_i32_0 : i32, i32
  }
  func.func @transform_9(%arg0: i32) -> (i32, i32) {
    %c0_i32 = arith.constant 0 : i32
    %c0_i32_0 = arith.constant 0 : i32
    return %arg0, %c0_i32 : i32, i32
  }
}

</mosaic_0001>

<bundles_post_ra>
// kernel: tpu_custom_call.1
= control target key start
LH: loop header
LB: loop body
LE: loop exit
PB: predicated region body
PF: predicated region fallthrough
CT: control target
= control target key end

     0   :  { %14 = vsyncpa [#allocation3], 0  ;;  %s990_s0 = inlined_call_operand.hbm [shape: f32[8,12], index: 0, kind: input, shape index: {}]   ;;  %s991_s1 = inlined_call_operand.hbm [shape: f32[8,128], index: 1, kind: input, shape index: {}]   ;;  %s992_s2 = inlined_call_operand.hbm [shape: f32[12,128], index: 2, kind: input, shape index: {}]   ;;  %s993_s3 = inlined_call_operand.hbm [shape: f32[128,128], index: 3, kind: input, shape index: {}]   ;;  %s994_s4 = inlined_call_operand.vmem [shape: f32[1,128], index: 4, kind: input, shape index: {}]   ;;  %s995_s5 = inlined_call_operand.hbm [shape: f32[128,128], index: 5, kind: input, shape index: {}]   ;;  %s996_s6 = inlined_call_operand.vmem [shape: f32[1,128], index: 6, kind: input, shape index: {}]   ;;  %s997_s7 = inlined_call_operand.hbm [shape: f32[128,128], index: 7, kind: input, shape index: {}]   ;;  %s998_s8 = inlined_call_operand.vmem [shape: f32[1,128], index: 8, kind: input, shape index: {}]   ;;  %s999_s9 = inlined_call_operand.hbm [shape: f32[8,128], index: 9, kind: output, shape index: {}]  }
   0x1   :  { %15 = vsyncpa [#allocation6], 0 }
   0x2   :  { %16 = vsyncpa [#allocation9], 0 }
   0x3   :  { %17 = vsyncpa [#allocation12], 0 }
   0x4   :  { %18 = vsyncpa [#allocation4], 0  ;;  %s829_s30 = smov [#allocation5]  }
   0x5   :  { %s35_s10 = sshll.u32 %s829_s30, 4  ;;  %s36_s10 = int_to_ptr.vmem [resolvable:$true] %s35_s10 }
   0x6   :  { %s687_s11 = scalar_lea.vmem %s36_s10, 128  ;;  %p692_p1 = scmp.lt.s32.totalorder %s36_s10, %s36_s10 }
   0x7   :  { %p688_p0 = scmp.ne.s32.totalorder %s36_s10, %s687_s11  ;;  %p693_p2 = scmp.lt.s32.totalorder %s687_s11, %s687_s11 }
   0x9   :  { %p694_p3 = por %p693_p2, %p692_p1 }
   0xb   :  { %p695_p4 = pnand %p694_p3, %p688_p0 }
   0xd   :  { %698 = shalt.err (!%p695_p4)
}
   0xe   :  { %38 = dma.hbm_to_vmem [thread:$0]  %s991_s1, 128, %s36_s10, [#allocation6]  }
   0xf   :  { %s830_s14 = smov [#allocation8]   ;;  %s831_s16 = smov [#allocation2]  }
  0x10   :  { %s56_s15 = sshll.u32 %s830_s14, 4  ;;  %s25_s17 = sshll.u32 %s831_s16, 4  ;;  %s57_s15 = int_to_ptr.vmem [resolvable:$true] %s56_s15  ;;  %s26_s17 = int_to_ptr.vmem [resolvable:$true] %s25_s17 }
  0x11   :  { %s707_s18 = scalar_lea.vmem %s57_s15, 2048  ;;  %p712_p6 = scmp.lt.s32.totalorder %s57_s15, %s57_s15 }
  0x12   :  { %p708_p5 = scmp.ne.s32.totalorder %s57_s15, %s707_s18  ;;  %p713_p7 = scmp.lt.s32.totalorder %s707_s18, %s707_s18 }
  0x14   :  { %p714_p8 = por %p713_p7, %p712_p6 }
  0x16   :  { %p715_p9 = pnand %p714_p8, %p708_p5 }
  0x18   :  { %718 = shalt.err (!%p715_p9)
}
  0x19   :  { %s832_s19 = smov 128   ;;  %s833_s20 = smov 8  }
  0x1a   :  { %62 = dma.hbm_to_vmem [thread:$0]  %s993_s3, 2048, %s57_s15, [#allocation9], %s832_s19, %s832_s19, %s833_s20  }
  0x1b   :  { %s727_s1 = scalar_lea.vmem %s26_s17, 128  ;;  %p732_p11 = scmp.lt.s32.totalorder %s26_s17, %s26_s17 }
  0x1c   :  { %p728_p10 = scmp.ne.s32.totalorder %s26_s17, %s727_s1  ;;  %p733_p12 = scmp.lt.s32.totalorder %s727_s1, %s727_s1 }
  0x1e   :  { %p734_p13 = por %p733_p12, %p732_p11 }
  0x20   :  { %p735_p0 = pnand %p734_p13, %p728_p10 }
  0x22   :  { %738 = shalt.err (!%p735_p0)
}
  0x23   :  { %28 = dma.hbm_to_vmem [thread:$0]  %s990_s0, 128, %s26_s17, [#allocation3]  }
  0x24   :  { %s834_s25 = smov [#allocation7]   ;;  %s835_s27 = smov [#allocation10]  }
  0x25   :  { %s44_s26 = sshll.u32 %s834_s25, 4  ;;  %s70_s28 = sshll.u32 %s835_s27, 4  ;;  %s45_s26 = int_to_ptr.vmem [resolvable:$true] %s44_s26  ;;  %s71_s28 = int_to_ptr.vmem [resolvable:$true] %s70_s28 }
  0x26   :  { %s747_s29 = scalar_lea.vmem %s45_s26, 256  ;;  %p752_p2 = scmp.lt.s32.totalorder %s45_s26, %s45_s26 }
  0x27   :  { %p748_p1 = scmp.ne.s32.totalorder %s45_s26, %s747_s29  ;;  %p753_p3 = scmp.lt.s32.totalorder %s747_s29, %s747_s29 }
  0x29   :  { %p754_p4 = por %p753_p3, %p752_p2 }
  0x2b   :  { %p755_p5 = pnand %p754_p4, %p748_p1 }
  0x2d   :  { %758 = shalt.err (!%p755_p5)
}
  0x2e   :  { %50 = dma.hbm_to_vmem [thread:$0]  %s992_s2, 256, %s45_s26, [#allocation6], %s832_s19, %s832_s19, %s833_s20  }
  0x2f   :  { %s767_s0 = scalar_lea.vmem %s71_s28, 2048  ;;  %p772_p7 = scmp.lt.s32.totalorder %s71_s28, %s71_s28 }
  0x30   :  { %p768_p6 = scmp.ne.s32.totalorder %s71_s28, %s767_s0  ;;  %p773_p8 = scmp.lt.s32.totalorder %s767_s0, %s767_s0 }
  0x32   :  { %p774_p9 = por %p773_p8, %p772_p7 }
  0x34   :  { %p775_p10 = pnand %p774_p9, %p768_p6 }
  0x36   :  { %778 = shalt.err (!%p775_p10)
}
  0x37   :  { %76 = dma.hbm_to_vmem [thread:$0]  %s995_s5, 2048, %s71_s28, [#allocation9], %s832_s19, %s832_s19, %s833_s20  }
  0x38   :  { %s836_s12 = smov [#allocation11]  }
  0x39   :  { %s84_s13 = sshll.u32 %s836_s12, 4  ;;  %s85_s13 = int_to_ptr.vmem [resolvable:$true] %s84_s13 }
  0x3a   :  { %s787_s14 = scalar_lea.vmem %s85_s13, 2048  ;;  %p792_p12 = scmp.lt.s32.totalorder %s85_s13, %s85_s13 }
  0x3b   :  { %p788_p11 = scmp.ne.s32.totalorder %s85_s13, %s787_s14  ;;  %p793_p13 = scmp.lt.s32.totalorder %s787_s14, %s787_s14 }
  0x3d   :  { %p794_p0 = por %p793_p13, %p792_p12 }
  0x3f   :  { %p795_p1 = pnand %p794_p0, %p788_p11 }
  0x41   :  { %798 = shalt.err (!%p795_p1)
}
  0x42   :  { %90 = dma.hbm_to_vmem [thread:$0]  %s997_s7, 2048, %s85_s13, [#allocation12], %s832_s19, %s832_s19, %s833_s20  }
  0x43   :  { %819 = dma.done.wait [#allocation3], 128  }
  0x44   :  { %820 = vsyncadd [#allocation3], 4294967168 }
  0x45   :  { %821 = dma.done.wait [#allocation6], 384  }
  0x46   :  { %822 = vsyncadd [#allocation6], 4294966912 }
  0x47   :  { %823 = dma.done.wait [#allocation9], 4096  }
  0x48   :  { %824 = vsyncadd [#allocation9], 4294963200 }
  0x49   :  { %825 = dma.done.wait [#allocation12], 2048  }
  0x4a   :  { %826 = vsyncadd [#allocation12], 4294965248  ;;  %v837_v0 = vmov 0.0   ;;  %vm838_vm0 = vmmov 0   ;;  %v130_v1 = vld [vmem:[#allocation8 + $0x78] sm:$0xff]  ;;  %v129_v2 = vld [vmem:[#allocation8 + $0x70] sm:$0xff] }
  0x4b   :  { %554 = vmatprep.subr.mxu0 %v837_v0  ;;  %589 = vmatprep.subr.mxu1 %v837_v0  ;;  %v128_v3 = vld [vmem:[#allocation8 + $0x68] sm:$0xff]  ;;  %vm205_vm1 = vcmask 1043456   ;;  %v127_v4 = vld [vmem:[#allocation8 + $0x60] sm:$0xff]  ;;  %v114_v5 = vld [vmem:[#allocation7 + $0x8] sm:$0xf]  ;;  %vm201_vm2 = vcmask 97280  }
  0x4c   :  { %593 = vmatprep.mubr.msk.f32.mxu1 %vm838_vm0, %v837_v0  ;;  %586 = vmatprep.mubr.msk.f32.mxu0 %vm838_vm0, %v837_v0  ;;  %v113_v6 = vld [vmem:[#allocation7] sm:$0xff]  ;;  %v111_v7 = vld [vmem:[#allocation2] sm:$0xff]  ;;  %v126_v8 = vld [vmem:[#allocation8 + $0x58] sm:$0xff]  ;;  %s839_s19 = smov [#allocation13]  }
  0x4d   :  { %555 = vmatpush3.msra.mxu0 %v130_v1  ;;  %590 = vmatpush3.msk.msra.mxu1 %vm205_vm1, %v114_v5  ;;  %v303_v9 = vld [vmem:[#allocation10 + $0x78] sm:$0xff]  ;;  %v125_v10 = vld [vmem:[#allocation8 + $0x50] sm:$0xff]  ;;  %v124_v12 = vld [vmem:[#allocation8 + $0x48] sm:$0xff]  ;;  %s483_s20 = sshll.u32 %s839_s19, 4  ;;  %s484_s20 = int_to_ptr.vmem [resolvable:$true] %s483_s20 }
  0x4e   :  { %556 = vmatprep.subr.mxu0 %v837_v0  ;;  %591 = vmatprep.subr.mxu1 %v837_v0  ;;  %v302_v11 = vld [vmem:[#allocation10 + $0x70] sm:$0xff]  ;;  %v301_v13 = vld [vmem:[#allocation10 + $0x68] sm:$0xff]  ;;  %v123_v14 = vld [vmem:[#allocation8 + $0x40] sm:$0xff]  ;;  %s799_s21 = scalar_lea.vmem %s484_s20, 128  ;;  %p804_p3 = scmp.lt.s32.totalorder %s484_s20, %s484_s20 }
  0x4f   :  { %557 = vmatpush3.msra.mxu0 %v129_v2  ;;  %592 = vmatpush3.msra.mxu1 %v113_v6  ;;  %v300_v15 = vld [vmem:[#allocation10 + $0x60] sm:$0xff]  ;;  %v122_v16 = vld [vmem:[#allocation8 + $0x38] sm:$0xff]  ;;  %v121_v18 = vld [vmem:[#allocation8 + $0x30] sm:$0xff]  ;;  %p800_p2 = scmp.ne.s32.totalorder %s484_s20, %s799_s21  ;;  %p805_p4 = scmp.lt.s32.totalorder %s799_s21, %s799_s21 }
  0x50   :  { %558 = vmatprep.subr.mxu0 %v837_v0  ;;  %594 = vmatmul.mubr.msk.f32.vlgmr.msra.gmra.mxu1 %vm201_vm2, %v111_v7  ;;  %v299_v17 = vld [vmem:[#allocation10 + $0x58] sm:$0xff]  ;;  %v298_v19 = vld [vmem:[#allocation10 + $0x50] sm:$0xff]  ;;  %v120_v20 = vld [vmem:[#allocation8 + $0x28] sm:$0xff] }
  0x51   :  { %559 = vmatpush3.msra.mxu0 %v128_v3  ;;  %596 = vmatprep.subr.mxu1 %v837_v0  ;;  %v297_v21 = vld [vmem:[#allocation10 + $0x48] sm:$0xff]  ;;  %v119_v22 = vld [vmem:[#allocation8 + $0x20] sm:$0xff]  ;;  %v118_v24 = vld [vmem:[#allocation8 + $0x18] sm:$0xff]  ;;  %p806_p5 = por %p805_p4, %p804_p3 }
  0x52   :  { %560 = vmatprep.subr.mxu0 %v837_v0  ;;  %597 = vmatpush3.msra.mxu1 %v303_v9  ;;  %v296_v23 = vld [vmem:[#allocation10 + $0x40] sm:$0xff]  ;;  %v295_v25 = vld [vmem:[#allocation10 + $0x38] sm:$0xff]  ;;  %v117_v26 = vld [vmem:[#allocation8 + $0x10] sm:$0xff] }
  0x53   :  { %561 = vmatpush3.msra.mxu0 %v127_v4  ;;  %598 = vmatprep.subr.mxu1 %v837_v0  ;;  %v294_v27 = vld [vmem:[#allocation10 + $0x30] sm:$0xff]  ;;  %v116_v28 = vld [vmem:[#allocation8 + $0x8] sm:$0xff]  ;;  %v115_v30 = vld [vmem:[#allocation8] sm:$0xff]  ;;  %p807_p6 = pnand %p806_p5, %p800_p2 }
  0x54   :  { %562 = vmatprep.subr.mxu0 %v837_v0  ;;  %599 = vmatpush3.msra.mxu1 %v302_v11  ;;  %v293_v29 = vld [vmem:[#allocation10 + $0x28] sm:$0xff]  ;;  %v292_v32 = vld [vmem:[#allocation10 + $0x20] sm:$0xff]  ;;  %v291_v33 = vld [vmem:[#allocation10 + $0x18] sm:$0xff] }
  0x55   :  { %563 = vmatpush3.msra.mxu0 %v126_v8  ;;  %600 = vmatprep.subr.mxu1 %v837_v0  ;;  %v112_v31 = vld [vmem:[#allocation5] sm:$0xff]  ;;  %v290_v34 = vld [vmem:[#allocation10 + $0x10] sm:$0xff]  ;;  %v288_v36 = vld [vmem:[#allocation10] sm:$0xff] }
  0x56   :  { %564 = vmatprep.subr.mxu0 %v837_v0  ;;  %601 = vmatpush3.msra.mxu1 %v301_v13  ;;  %v289_v35 = vld [vmem:[#allocation10 + $0x8] sm:$0xff]  ;;  %v397_v37 = vld [vmem:[#allocation11 + $0x78] sm:$0xff]  ;;  %v396_v38 = vld [vmem:[#allocation11 + $0x70] sm:$0xff] }
  0x57   :  { %565 = vmatpush3.msra.mxu0 %v125_v10  ;;  %602 = vmatprep.subr.mxu1 %v837_v0  ;;  %v395_v39 = vld [vmem:[#allocation11 + $0x68] sm:$0xff]  ;;  %v394_v40 = vld [vmem:[#allocation11 + $0x60] sm:$0xff]  ;;  %v393_v41 = vld [vmem:[#allocation11 + $0x58] sm:$0xff] }
  0x58   :  { %566 = vmatprep.subr.mxu0 %v837_v0  ;;  %603 = vmatpush3.msra.mxu1 %v300_v15  ;;  %v392_v42 = vld [vmem:[#allocation11 + $0x50] sm:$0xff]  ;;  %v391_v43 = vld [vmem:[#allocation11 + $0x48] sm:$0xff]  ;;  %v390_v44 = vld [vmem:[#allocation11 + $0x40] sm:$0xff] }
  0x59   :  { %567 = vmatpush3.msra.mxu0 %v124_v12  ;;  %604 = vmatprep.subr.mxu1 %v837_v0  ;;  %v389_v45 = vld [vmem:[#allocation11 + $0x38] sm:$0xff]  ;;  %v388_v46 = vld [vmem:[#allocation11 + $0x30] sm:$0xff]  ;;  %v387_v47 = vld [vmem:[#allocation11 + $0x28] sm:$0xff] }
  0x5a   :  { %568 = vmatprep.subr.mxu0 %v837_v0  ;;  %605 = vmatpush3.msra.mxu1 %v299_v17  ;;  %v386_v48 = vld [vmem:[#allocation11 + $0x20] sm:$0xff]  ;;  %v385_v49 = vld [vmem:[#allocation11 + $0x18] sm:$0xff]  ;;  %v384_v58 = vld [vmem:[#allocation11 + $0x10] sm:$0xff] }
  0x5b   :  { %569 = vmatpush3.msra.mxu0 %v123_v14  ;;  %606 = vmatprep.subr.mxu1 %v837_v0  ;;  %v497_v53 = vld [vmem:[%s994_s4] ss:$0 sm:$0xff]  ;;  %v383_v59 = vld [vmem:[#allocation11 + $0x8] sm:$0xff] }
  0x5c   :  { %570 = vmatprep.subr.mxu0 %v837_v0  ;;  %607 = vmatpush3.msra.mxu1 %v298_v19  ;;  %v382_v60 = vld [vmem:[#allocation11] sm:$0xff] }
  0x5d   :  { %571 = vmatpush3.msra.mxu0 %v122_v16  ;;  %608 = vmatprep.subr.mxu1 %v837_v0  ;;  %v498_v61 = vld [vmem:[%s996_s6] ss:$0 sm:$0xff] }
  0x5e   :  { %572 = vmatprep.subr.mxu0 %v837_v0  ;;  %609 = vmatpush3.msra.mxu1 %v297_v21  ;;  %v499_v3 = vld [vmem:[%s998_s8] ss:$0 sm:$0xff] }
  0x5f   :  { %573 = vmatpush3.msra.mxu0 %v121_v18  ;;  %610 = vmatprep.subr.mxu1 %v837_v0 }
  0x60   :  { %574 = vmatprep.subr.mxu0 %v837_v0  ;;  %611 = vmatpush3.msra.mxu1 %v296_v23 }
  0x61   :  { %575 = vmatpush3.msra.mxu0 %v120_v20  ;;  %612 = vmatprep.subr.mxu1 %v837_v0 }
  0x62   :  { %576 = vmatprep.subr.mxu0 %v837_v0  ;;  %613 = vmatpush3.msra.mxu1 %v295_v25 }
  0x63   :  { %577 = vmatpush3.msra.mxu0 %v119_v22  ;;  %614 = vmatprep.subr.mxu1 %v837_v0 }
  0x64   :  { %578 = vmatprep.subr.mxu0 %v837_v0  ;;  %615 = vmatpush3.msra.mxu1 %v294_v27 }
  0x65   :  { %579 = vmatpush3.msra.mxu0 %v118_v24  ;;  %616 = vmatprep.subr.mxu1 %v837_v0 }
  0x66   :  { %580 = vmatprep.subr.mxu0 %v837_v0  ;;  %617 = vmatpush3.msra.mxu1 %v293_v29 }
  0x67   :  { %581 = vmatpush3.msra.mxu0 %v117_v26  ;;  %618 = vmatprep.subr.mxu1 %v837_v0 }
  0x68   :  { %582 = vmatprep.subr.mxu0 %v837_v0  ;;  %628 = vmatprep.mubr.msk.f32.mxu1 %vm838_vm0, %v837_v0 }
  0x69   :  { %583 = vmatpush3.msra.mxu0 %v116_v28  ;;  %619 = vmatpush3.msra.mxu1 %v292_v32 }
  0x6a   :  { %584 = vmatprep.subr.mxu0 %v837_v0  ;;  %620 = vmatprep.subr.mxu1 %v837_v0 }
  0x6b   :  { %585 = vmatpush3.msra.mxu0 %v115_v30  ;;  %621 = vmatpush3.msra.mxu1 %v291_v33 }
  0x6c   :  { %587 = vmatmul.mubr.f32.vlgmr.msra.gmra.mxu0 %v112_v31  ;;  %631 = vmatprep.subr.mxu0 %v837_v0 }
  0x6d   :  { %663 = vmatprep.mubr.msk.f32.mxu0 %vm838_vm0, %v837_v0  ;;  %622 = vmatprep.subr.mxu1 %v837_v0 }
  0x6e   :  { %623 = vmatpush3.msra.mxu1 %v290_v34  ;;  %632 = vmatpush3.msra.mxu0 %v397_v37 }
  0x6f   :  { %624 = vmatprep.subr.mxu1 %v837_v0  ;;  %633 = vmatprep.subr.mxu0 %v837_v0 }
  0x70   :  { %625 = vmatpush3.msra.mxu1 %v289_v35  ;;  %634 = vmatpush3.msra.mxu0 %v396_v38 }
  0x71   :  { %626 = vmatprep.subr.mxu1 %v837_v0  ;;  %635 = vmatprep.subr.mxu0 %v837_v0 }
  0x72   :  { %627 = vmatpush3.msra.mxu1 %v288_v36  ;;  %636 = vmatpush3.msra.mxu0 %v395_v39 }
  0x73   :  { %637 = vmatprep.subr.mxu0 %v837_v0 }
  0x74   :  { %638 = vmatpush3.msra.mxu0 %v394_v40 }
  0x75   :  { %639 = vmatprep.subr.mxu0 %v837_v0 }
  0x76   :  { %640 = vmatpush3.msra.mxu0 %v393_v41 }
  0x77   :  { %641 = vmatprep.subr.mxu0 %v837_v0 }
  0x78   :  { %642 = vmatpush3.msra.mxu0 %v392_v42 }
  0x79   :  { %643 = vmatprep.subr.mxu0 %v837_v0 }
  0x7a   :  { %644 = vmatpush3.msra.mxu0 %v391_v43 }
  0x7b   :  { %645 = vmatprep.subr.mxu0 %v837_v0 }
  0x7c   :  { %646 = vmatpush3.msra.mxu0 %v390_v44 }
  0x7d   :  { %647 = vmatprep.subr.mxu0 %v837_v0 }
  0x7e   :  { %648 = vmatpush3.msra.mxu0 %v389_v45 }
  0x7f   :  { %649 = vmatprep.subr.mxu0 %v837_v0 }
  0x80   :  { %650 = vmatpush3.msra.mxu0 %v388_v46 }
  0x81   :  { %651 = vmatprep.subr.mxu0 %v837_v0 }
  0x82   :  { %652 = vmatpush3.msra.mxu0 %v387_v47 }
  0x83   :  { %653 = vmatprep.subr.mxu0 %v837_v0 }
  0x84   :  { %654 = vmatpush3.msra.mxu0 %v386_v48 }
  0x85   :  { %655 = vmatprep.subr.mxu0 %v837_v0 }
  0x86   :  { %656 = vmatpush3.msra.mxu0 %v385_v49 }
  0x87   :  { %657 = vmatprep.subr.mxu0 %v837_v0 }
  0x88   :  { %658 = vmatpush3.msra.mxu0 %v384_v58 }
  0x89   :  { %659 = vmatprep.subr.mxu0 %v837_v0 }
  0x8a   :  { %660 = vmatpush3.msra.mxu0 %v383_v59 }
  0x8b   :  { %661 = vmatprep.subr.mxu0 %v837_v0 }
  0x8c   :  { %662 = vmatpush3.msra.mxu0 %v382_v60 }
 0x110   :  { %v275_v50 = vpop.f32.mrf.mxu1 }
 0x112   :  { %v595_v51 = vpop.f32.mrf.mxu1 }
 0x12c   :  { %v197_v52 = vpop.f32.mrf.mxu0 }
 0x12d   :  { %v276_v54 = vadd.f32 %v275_v50, %v197_v52 }
 0x12e   :  { %v588_v55 = vpop.f32.mrf.mxu0 }
 0x12f   :  { %v286_v56 = vadd.f32 %v497_v53, %v276_v54 }
 0x131   :  { %v287_v57 = vmax.f32 %v286_v56, 0.0 }
 0x133   :  { %629 = vmatmul.mubr.f32.vlgmr.msra.gmra.mxu1 %v287_v57 }
 0x1f3   :  { %v377_v62 = vpop.f32.mrf.mxu1 }
 0x1f4   :  { %v378_v63 = vadd.f32 %v498_v61, %v377_v62 }
 0x1f5   :  { %v630_v1 = vpop.f32.mrf.mxu1 }
 0x1f6   :  { %v381_v2 = vmax.f32 %v378_v63, 0.0 }
 0x1f8   :  { %664 = vmatmul.mubr.f32.vlgmr.msra.gmra.mxu0 %v381_v2 }
 0x2b8   :  { %v471_v4 = vpop.f32.mrf.mxu0 }
 0x2b9   :  { %v472_v5 = vadd.f32 %v499_v3, %v471_v4 }
 0x2ba   :  { %v665_v6 = vpop.f32.mrf.mxu0 }
 0x2bb   :  { %677 = vtanh.f32 %v472_v5 }
 0x2c8   :  { %v678_v0 = vpop.eup %677 }
 0x2c9   :  { %476 = vst [vmem:[#allocation13] sm:$0xff] %v678_v0 }
 0x2ca   :  { %810 = shalt.err (!%p807_p6)
}
 0x2cb   :  { %486 = dma.vmem_to_hbm [thread:$0]  %s484_s20, 128, %s999_s9, [#allocation4]  }
 0x2cc   :  { %827 = dma.done.wait [#allocation4], 128  }
 0x2cd   :  { %828 = vsyncadd [#allocation4], 4294967168 }
 0x2ce   :  { %490 = vsyncpa [#allocation3], 1 }
 0x2cf   :  { %491 = vsyncpa [#allocation6], 1 }
 0x2d0   :  { %492 = vsyncpa [#allocation9], 1 }
 0x2d1   :  { %493 = vsyncpa [#allocation12], 1 }
 0x2d2   :  { %494 = vsyncpa [#allocation4], 1 }

</bundles_post_ra>
